<compile_context>
chip_gen: v7x
topology: tpu7x:2x2x1
jax: 0.10.0
libtpu: 0.0.40
codegen_flags: <defaults>
</compile_context>

<pallas_src>
import functools

import jax
import jax.numpy as jnp
from jax.experimental import pallas as pl
from jax.experimental.pallas import tpu as pltpu

LANES = 128
SUBLANES = 8
DEFAULT_BLOCK_ROWS = 2048   # (2048, 128) f32 = 1 MiB per input block
NUM_CORE_SPLITS = 2         # 2 TCs on v7x; serial (and harmless) on v5e/v6e


def _rhloss_kernel(out_ref, tgt_ref, sum_ref, cnt_ref, *,
                   max_disp, n_valid, block_rows, blocks_per_split):
    c = pl.program_id(0)   # core split ("parallel")
    i = pl.program_id(1)   # row-block sweep ("arbitrary", reduction axis)

    @pl.when(i == 0)
    def _init():
        sum_ref[...] = jnp.zeros_like(sum_ref)
        cnt_ref[...] = jnp.zeros_like(cnt_ref)

    o = out_ref[...].astype(jnp.float32)   # (block_rows, 128)
    t = tgt_ref[...].astype(jnp.float32)

    # Global element index of every slot in this block. Handles the ragged
    # tail and fully-out-of-range (clamped) blocks without padding inputs.
    row_start = (c * blocks_per_split + i) * block_rows
    row_ids = row_start + jax.lax.broadcasted_iota(jnp.int32, o.shape, 0)
    lane_ids = jax.lax.broadcasted_iota(jnp.int32, o.shape, 1)
    gidx = row_ids * LANES + lane_ids

    valid = (gidx < n_valid) & (t < max_disp)

    d = o - t
    ad = jnp.abs(d)
    elem = jnp.where(ad < 1.0, 0.5 * d * d, ad - 0.5)   # SmoothL1, beta=1
    elem = jnp.where(valid, elem, 0.0)
    cnt = valid.astype(jnp.int32)

    # Fold the block into (8, 128) vector accumulators (pure VALU adds); the
    # final cross-lane/cross-sublane reduce happens outside the kernel.
    sum_ref[...] += elem.reshape(-1, SUBLANES, LANES).sum(axis=0)[None]
    cnt_ref[...] += cnt.reshape(-1, SUBLANES, LANES).sum(axis=0)[None]


def rh_loss(output, target, max_disp):
    """Masked SmoothL1 mean loss. output/target: same shape (e.g. NCHW)."""
    assert output.shape == target.shape
    out_f = output.reshape(-1)
    tgt_f = target.reshape(-1)
    n = out_f.shape[0]
    if n == 0:
        return jnp.float32(jnp.nan)

    rows = pl.cdiv(n, LANES)
    if rows >= DEFAULT_BLOCK_ROWS:
        # Large input: lane-align only. If n is already a multiple of 128
        # (typical for image-shaped tensors) this is a zero-copy reshape.
        block_rows = DEFAULT_BLOCK_ROWS
        n_aligned = rows * LANES
    else:
        # Tiny input: also sublane-align so the single block is (8k, 128).
        block_rows = pl.cdiv(rows, SUBLANES) * SUBLANES
        rows = block_rows
        n_aligned = rows * LANES
    if n_aligned != n:
        pad = n_aligned - n
        out_f = jnp.pad(out_f, (0, pad))
        tgt_f = jnp.pad(tgt_f, (0, pad))

    out_2d = out_f.reshape(-1, LANES)
    tgt_2d = tgt_f.reshape(-1, LANES)
    rows_total = out_2d.shape[0]

    num_row_blocks = pl.cdiv(rows_total, block_rows)
    blocks_per_split = pl.cdiv(num_row_blocks, NUM_CORE_SPLITS)

    def in_index_map(c, i):
        # Clamp so blocks past the end re-read the last real block; their
        # contribution is masked to zero inside the kernel via gidx >= n.
        blk = jnp.minimum(c * blocks_per_split + i, num_row_blocks - 1)
        return (blk, 0)

    kernel = functools.partial(
        _rhloss_kernel,
        max_disp=float(max_disp),   # static per module instance (RHLoss(max_disp))
        n_valid=n,
        block_rows=block_rows,
        blocks_per_split=blocks_per_split,
    )

    sum_acc, cnt_acc = pl.pallas_call(
        kernel,
        out_shape=(
            jax.ShapeDtypeStruct((NUM_CORE_SPLITS, SUBLANES, LANES), jnp.float32),
            jax.ShapeDtypeStruct((NUM_CORE_SPLITS, SUBLANES, LANES), jnp.int32),
        ),
        grid_spec=pltpu.PrefetchScalarGridSpec(
            num_scalar_prefetch=0,
            grid=(NUM_CORE_SPLITS, blocks_per_split),
            in_specs=[
                pl.BlockSpec((block_rows, LANES), in_index_map),
                pl.BlockSpec((block_rows, LANES), in_index_map),
            ],
            out_specs=[
                pl.BlockSpec((1, SUBLANES, LANES), lambda c, i: (c, 0, 0)),
                pl.BlockSpec((1, SUBLANES, LANES), lambda c, i: (c, 0, 0)),
            ],
        ),
        compiler_params=pltpu.CompilerParams(
            dimension_semantics=("parallel", "arbitrary"),
        ),
    )(out_2d, tgt_2d)

    total_sum = jnp.sum(sum_acc)                     # f32
    total_cnt = jnp.sum(cnt_acc)                     # exact int32 count
    # Mean over masked elements (NaN if mask is empty, matching torch).
    return (total_sum / total_cnt.astype(jnp.float32)).astype(jnp.float32)


class RHLoss:
    """Thin functional mirror of the PyTorch module."""

    def __init__(self, max_disp):
        self.max_disp = float(max_disp)

    def __call__(self, output, target):
        return rh_loss(output, target, self.max_disp)


def rh_loss_ref(output, target, max_disp):
    mask = target < max_disp
    d = (output - target).astype(jnp.float32)
    ad = jnp.abs(d)
    elem = jnp.where(ad < 1.0, 0.5 * d * d, ad - 0.5)
    elem = jnp.where(mask, elem, 0.0)
    return jnp.sum(elem) / jnp.sum(mask.astype(jnp.float32))


if __name__ == "__main__":
    max_disp = 4.0
    crit = RHLoss(max_disp)

    key = jax.random.PRNGKey(0)
    k1, k2, k3, k4 = jax.random.split(key, 4)

    # Small NCHW disparity maps (lane-aligned path, no padding).
    output = jax.random.uniform(k1, (2, 4, 16, 16), jnp.float32) * 8.0
    target = jax.random.uniform(k2, (2, 4, 16, 16), jnp.float32) * 8.0
    loss = crit(output, target)
    jax.block_until_ready(loss)
    ref = rh_loss_ref(output, target, max_disp)
    assert jnp.allclose(loss, ref, rtol=1e-5, atol=1e-6), (loss, ref)

    # Misaligned tiny input exercises the in-kernel tail masking path.
    output2 = jax.random.uniform(k3, (1, 3, 5, 7), jnp.float32) * 8.0
    target2 = jax.random.uniform(k4, (1, 3, 5, 7), jnp.float32) * 8.0
    loss2 = crit(output2, target2)
    jax.block_until_ready(loss2)
    ref2 = rh_loss_ref(output2, target2, max_disp)
    assert jnp.allclose(loss2, ref2, rtol=1e-5, atol=1e-6), (loss2, ref2)

    print("KERNEL_OK")
</pallas_src>

<mosaic_0001>
module attributes {stable_mosaic.version = 11 : i64} {
  func.func @_rhloss_kernel(%arg0: i32, %arg1: i32, %arg2: memref<16x128xf32, #tpu.memory_space<vmem>>, %arg3: memref<16x128xf32, #tpu.memory_space<vmem>>, %arg4: memref<1x8x128xf32, #tpu.memory_space<vmem>>, %arg5: memref<1x8x128xi32, #tpu.memory_space<vmem>>) attributes {dimension_semantics = [#tpu.dimension_semantics<parallel>, #tpu.dimension_semantics<arbitrary>], iteration_bounds = array<i64: 2, 1>, scalar_prefetch = 0 : i64, scratch_operands = 0 : i64, tpu.core_type = #tpu.core_type<tc>, window_params = [{transform_indices = @transform_0, window_bounds = array<i64: 16, 128>}, {transform_indices = @transform_1, window_bounds = array<i64: 16, 128>}, {transform_indices = @transform_2, window_bounds = array<i64: 1, 8, 128>}, {transform_indices = @transform_3, window_bounds = array<i64: 1, 8, 128>}]} {
    %c0_i32 = arith.constant 0 : i32
    %0 = arith.cmpi eq, %arg1, %c0_i32 : i32
    %1 = arith.extui %0 : i1 to i32
    %c0_i32_0 = arith.constant 0 : i32
    %2 = arith.cmpi ne, %1, %c0_i32_0 : i32
    scf.if %2 {
      %cst_22 = arith.constant 0.000000e+00 : f32
      %45 = vector.broadcast %cst_22 : f32 to vector<1x8x128xf32>
      %c0_23 = arith.constant 0 : index
      %c0_24 = arith.constant 0 : index
      %c0_25 = arith.constant 0 : index
      %46 = vector.load %arg4[%c0_23, %c0_24, %c0_25] : memref<1x8x128xf32, #tpu.memory_space<vmem>>, vector<1x8x128xf32>
      tpu.vector_store %arg4[%c0_23, %c0_24, %c0_25], %45 {strides = array<i32>} : memref<1x8x128xf32, #tpu.memory_space<vmem>>, vector<1x8x128xf32>,
      %c0_i32_26 = arith.constant 0 : i32
      %47 = vector.broadcast %c0_i32_26 : i32 to vector<1x8x128xi32>
      %c0_27 = arith.constant 0 : index
      %c0_28 = arith.constant 0 : index
      %c0_29 = arith.constant 0 : index
      %48 = vector.load %arg5[%c0_27, %c0_28, %c0_29] : memref<1x8x128xi32, #tpu.memory_space<vmem>>, vector<1x8x128xi32>
      tpu.vector_store %arg5[%c0_27, %c0_28, %c0_29], %47 {strides = array<i32>} : memref<1x8x128xi32, #tpu.memory_space<vmem>>, vector<1x8x128xi32>,
    } else {
    }
    %c0 = arith.constant 0 : index
    %c0_1 = arith.constant 0 : index
    %3 = vector.load %arg2[%c0, %c0_1] : memref<16x128xf32, #tpu.memory_space<vmem>>, vector<16x128xf32>
    %c0_2 = arith.constant 0 : index
    %c0_3 = arith.constant 0 : index
    %4 = vector.load %arg3[%c0_2, %c0_3] : memref<16x128xf32, #tpu.memory_space<vmem>>, vector<16x128xf32>
    %c1_i32 = arith.constant 1 : i32
    %5 = arith.muli %arg0, %c1_i32 : i32
    %6 = arith.addi %5, %arg1 : i32
    %c16_i32 = arith.constant 16 : i32
    %7 = arith.muli %6, %c16_i32 : i32
    %8 = tpu.iota {dimensions = array<i32: 0>} : vector<16x128xi32>
    %9 = vector.broadcast %7 : i32 to vector<16x128xi32>
    %10 = arith.addi %9, %8 : vector<16x128xi32>
    %11 = tpu.iota {dimensions = array<i32: 1>} : vector<16x128xi32>
    %c128_i32 = arith.constant 128 : i32
    %12 = vector.broadcast %c128_i32 : i32 to vector<16x128xi32>
    %13 = arith.muli %10, %12 : vector<16x128xi32>
    %14 = arith.addi %13, %11 : vector<16x128xi32>
    %c2048_i32 = arith.constant 2048 : i32
    %15 = vector.broadcast %c2048_i32 : i32 to vector<16x128xi32>
    %16 = arith.cmpi slt, %14, %15 : vector<16x128xi32>
    %cst = arith.constant 4.000000e+00 : f32
    %17 = vector.broadcast %cst : f32 to vector<16x128xf32>
    %18 = arith.cmpf olt, %4, %17 : vector<16x128xf32>
    %19 = arith.andi %16, %18 : vector<16x128xi1>
    %20 = arith.subf %3, %4 : vector<16x128xf32>
    %21 = math.absf %20 : vector<16x128xf32>
    %cst_4 = arith.constant 1.000000e+00 : f32
    %22 = vector.broadcast %cst_4 : f32 to vector<16x128xf32>
    %23 = arith.cmpf olt, %21, %22 : vector<16x128xf32>
    %cst_5 = arith.constant 5.000000e-01 : f32
    %24 = vector.broadcast %cst_5 : f32 to vector<16x128xf32>
    %25 = arith.mulf %24, %20 : vector<16x128xf32>
    %26 = arith.mulf %25, %20 : vector<16x128xf32>
    %cst_6 = arith.constant 5.000000e-01 : f32
    %27 = vector.broadcast %cst_6 : f32 to vector<16x128xf32>
    %28 = arith.subf %21, %27 : vector<16x128xf32>
    %29 = arith.select %23, %26, %28 : vector<16x128xi1>, vector<16x128xf32>
    %cst_7 = arith.constant 0.000000e+00 : f32
    %30 = vector.broadcast %cst_7 : f32 to vector<16x128xf32>
    %31 = arith.select %19, %29, %30 : vector<16x128xi1>, vector<16x128xf32>
    %32 = arith.extui %19 : vector<16x128xi1> to vector<16x128xi32>
    %c0_8 = arith.constant 0 : index
    %c0_9 = arith.constant 0 : index
    %c0_10 = arith.constant 0 : index
    %33 = vector.load %arg4[%c0_8, %c0_9, %c0_10] : memref<1x8x128xf32, #tpu.memory_space<vmem>>, vector<1x8x128xf32>
    %34 = vector.shape_cast %31 : vector<16x128xf32> to vector<2x8x128xf32>
    %cst_11 = arith.constant dense<0.000000e+00> : vector<8x128xf32>
    %35 = vector.multi_reduction <add>, %34, %cst_11 [0] : vector<2x8x128xf32> to vector<8x128xf32>
    %36 = vector.shape_cast %35 : vector<8x128xf32> to vector<1x8x128xf32>
    %37 = arith.addf %33, %36 : vector<1x8x128xf32>
    %c0_12 = arith.constant 0 : index
    %c0_13 = arith.constant 0 : index
    %c0_14 = arith.constant 0 : index
    %38 = vector.load %arg4[%c0_12, %c0_13, %c0_14] : memref<1x8x128xf32, #tpu.memory_space<vmem>>, vector<1x8x128xf32>
    tpu.vector_store %arg4[%c0_12, %c0_13, %c0_14], %37 {strides = array<i32>} : memref<1x8x128xf32, #tpu.memory_space<vmem>>, vector<1x8x128xf32>,
    %c0_15 = arith.constant 0 : index
    %c0_16 = arith.constant 0 : index
    %c0_17 = arith.constant 0 : index
    %39 = vector.load %arg5[%c0_15, %c0_16, %c0_17] : memref<1x8x128xi32, #tpu.memory_space<vmem>>, vector<1x8x128xi32>
    %40 = vector.shape_cast %32 : vector<16x128xi32> to vector<2x8x128xi32>
    %cst_18 = arith.constant dense<0> : vector<8x128xi32>
    %41 = vector.multi_reduction <add>, %40, %cst_18 [0] : vector<2x8x128xi32> to vector<8x128xi32>
    %42 = vector.shape_cast %41 : vector<8x128xi32> to vector<1x8x128xi32>
    %43 = arith.addi %39, %42 : vector<1x8x128xi32>
    %c0_19 = arith.constant 0 : index
    %c0_20 = arith.constant 0 : index
    %c0_21 = arith.constant 0 : index
    %44 = vector.load %arg5[%c0_19, %c0_20, %c0_21] : memref<1x8x128xi32, #tpu.memory_space<vmem>>, vector<1x8x128xi32>
    tpu.vector_store %arg5[%c0_19, %c0_20, %c0_21], %43 {strides = array<i32>} : memref<1x8x128xi32, #tpu.memory_space<vmem>>, vector<1x8x128xi32>,
    return
  }
  func.func @transform_0(%arg0: i32, %arg1: i32) -> (i32, i32) {
    %c1_i32 = arith.constant 1 : i32
    %0 = arith.muli %arg0, %c1_i32 : i32
    %1 = arith.addi %0, %arg1 : i32
    %c0_i32 = arith.constant 0 : i32
    %2 = arith.minsi %1, %c0_i32 : i32
    %c0_i32_0 = arith.constant 0 : i32
    %c0_i32_1 = arith.constant 0 : i32
    return %2, %c0_i32_0 : i32, i32
  }
  func.func @transform_1(%arg0: i32, %arg1: i32) -> (i32, i32) {
    %c1_i32 = arith.constant 1 : i32
    %0 = arith.muli %arg0, %c1_i32 : i32
    %1 = arith.addi %0, %arg1 : i32
    %c0_i32 = arith.constant 0 : i32
    %2 = arith.minsi %1, %c0_i32 : i32
    %c0_i32_0 = arith.constant 0 : i32
    %c0_i32_1 = arith.constant 0 : i32
    return %2, %c0_i32_0 : i32, i32
  }
  func.func @transform_2(%arg0: i32, %arg1: i32) -> (i32, i32, i32) {
    %c0_i32 = arith.constant 0 : i32
    %c0_i32_0 = arith.constant 0 : i32
    %c0_i32_1 = arith.constant 0 : i32
    return %arg0, %c0_i32, %c0_i32_0 : i32, i32, i32
  }
  func.func @transform_3(%arg0: i32, %arg1: i32) -> (i32, i32, i32) {
    %c0_i32 = arith.constant 0 : i32
    %c0_i32_0 = arith.constant 0 : i32
    %c0_i32_1 = arith.constant 0 : i32
    return %arg0, %c0_i32, %c0_i32_0 : i32, i32, i32
  }
}

</mosaic_0001>

<bundles_post_ra>
// kernel: tpu_custom_call.1
= control target key start
LH: loop header
LB: loop body
LE: loop exit
PB: predicated region body
PF: predicated region fallthrough
CT: control target
= control target key end

     0   :  { %9 = vsyncpa [#allocation3], 0  ;;  %s1112_s0 = inlined_call_operand.hbm [shape: f32[16,128], index: 0, kind: input, shape index: {}]   ;;  %s1113_s1 = inlined_call_operand.hbm [shape: f32[16,128], index: 1, kind: input, shape index: {}]   ;;  %s1114_s2 = inlined_call_operand.hbm [shape: f32[2,8,128], index: 2, kind: output, shape index: {0}]   ;;  %s1115_s3 = inlined_call_operand.hbm [shape: s32[2,8,128], index: 3, kind: output, shape index: {1}]  }
   0x1   :  { %11 = vsyncpa [#allocation3 + $0x1], 0 }
   0x2   :  { %12 = vsyncpa [#allocation6], 0 }
   0x3   :  { %14 = vsyncpa [#allocation6 + $0x1], 0 }
   0x4   :  { %15 = vsyncpa [#allocation4], 0 }
   0x5   :  { %17 = vsyncpa [#allocation4 + $0x1], 0 }
   0x6   :  { %18 = vsyncpa [#allocation9], 0 }
   0x7   :  { %20 = vsyncpa [#allocation9 + $0x1], 0  ;;  %s853_s12 = smov 0   ;;  %s855_s13 = smov 0  }
   0x8   :  { %s857_s14 = smov 0   ;;  %s859_s15 = smov 0  }
   0x9   :  { %s861_s16 = smov 0   ;;  %s863_s17 = smov 0  }
   0xa   :  { %s865_s18 = smov 0   ;;  %s867_s19 = smov 0  }
   0xb LB: > { %s499_s20 = sadd.s32 4294967295, %s824_s19   ;;  %s500_s21 = sadd.s32 4294967294, %s824_s19   ;;  %s824_s19 = sphi %s867_s19, %s26_s19   ;;  %s820_s18 = sphi %s865_s18, %s1138_s18   ;;  %s816_s17 = sphi %s863_s17, %s1137_s17   ;;  %s812_s16 = sphi %s861_s16, %s1102_s16   ;;  %s808_s15 = sphi %s859_s15, %s1136_s15   ;;  %s804_s14 = sphi %s857_s14, %s1135_s14   ;;  %s800_s13 = sphi %s855_s13, %s1134_s13   ;;  %s796_s12 = sphi %s853_s12, %s1133_s12  }
   0xc   : > { %s38_s22 = sadd.s32 1, %s820_s18  ;;  %p793_p1 = scmp.ne.s32.totalorder %s812_s16, 0 }
   0xd   : > { %p40_p0 = scmp.ge.s32.totalorder %s38_s22, 2  ;;  %p59_p2 = scmp.eq.s32.totalorder %s824_s19, 0 }
   0xe   : > { %p64_p3 = scmp.ne.s32.totalorder %s812_s16, %s808_s15  ;;  %p65_p5 = scmp.eq.s32.totalorder %s499_s20, 0 }
   0xf   : > { %s1140_s22 = smov (%p40_p0, %s38_s22), 0  ;;  %p899_p4 = por %p793_p1, %p59_p2 }
  0x10   : > { %p903_p6 = por %p65_p5, %p64_p3  ;;  %s106_s25 = ssub.s32 %s820_s18, %s1140_s22 }
  0x11   : > { %p107_p7 = scmp.eq.s32.totalorder %s106_s25, 0  ;;  %s109_s26 = sadd.s32 1, %s804_s14 }
  0x12   : > { %s1119_s24 = scalar_select %p903_p6, 1, 0 }
  0x13   : > { %s911_s27 = scalar_select %p107_p7, %s804_s14, %s109_s26  }
  0x14   : > { %p119_p8 = scmp.ne.s32.totalorder %s804_s14, %s800_s13  ;;  %p120_p9 = scmp.eq.s32.totalorder %s499_s20, 1 }
  0x15   : > { %p125_p10 = scmp.ne.s32.totalorder %s800_s13, %s796_s12  ;;  %p126_p11 = scmp.eq.s32.totalorder %s500_s21, 1 }
  0x16   : > { %p917_p12 = por %p120_p9, %p119_p8  ;;  %p547_p1 = scmp.lt.s32.totalorder %s824_s19, 2 }
  0x17   : > { %p922_p0 = por %p126_p11, %p125_p10  ;;  %s826_s30 = smov [#allocation2]  }
  0x18   : > { %s1120_s28 = scalar_select %p917_p12, 1, 0 }
  0x19   : > { %s1121_s29 = scalar_select %p922_p0, 1, 0 }
  0x1a   : > { %s186_s4 = sshll.u32 %s826_s30, 4  ;;  %p929_p2 = pnand %p547_p1, %p899_p4  ;;  %s187_s4 = int_to_ptr.vmem [resolvable:$true] %s186_s4 }
  0x1b   : > { %s625_s8 = scalar_lea.hbm %s1112_s0, 256 }
  0x1c   : > { %p626_p3 = scmp.ne.s32.totalorder %s1112_s0, %s625_s8  ;;  %p627_p5 = pneg %p929_p2 }
  0x1d   : > { %p632_p8 = scmp.lt.u32.totalorder %s625_s8, %s625_s8  ;;  %p634_p9 = scmp.lt.u32.totalorder %s625_s8, %s1112_s0 }
  0x1e   : > { %p628_p7 = pnand %p627_p5, %p626_p3 }
  0x1f   : > { %p635_p10 = por %p634_p9, %p632_p8 }
  0x20   : > { %p629_p4 = pneg %p628_p7 }
  0x22   : > { %p636_p11 = pnand %p635_p10, %p629_p4 }
  0x24   : > { %639 = shalt.err (!%p636_p11)
}
  0x25   : > { %s640_s20 = scalar_lea.vmem %s187_s4, 256  ;;  %s647_s21 = scalar_lea.vmem %s187_s4, 512 }
  0x26   : > { %p641_p1 = scmp.ne.s32.totalorder %s187_s4, %s640_s20  ;;  %p648_p12 = scmp.lt.s32.totalorder %s187_s4, %s187_s4 }
  0x27   : > { %p649_p6 = scmp.lt.s32.totalorder %s647_s21, %s640_s20 }
  0x28   : > { %p643_p13 = pnand %p641_p1, %p627_p5 }
  0x29   : > { %p650_p3 = por %p649_p6, %p648_p12 }
  0x2a   : > { %p644_p0 = pneg %p643_p13 }
  0x2c   : > { %p651_p7 = pnand %p650_p3, %p644_p0 }
  0x2e   : > { %654 = shalt.err (!%p651_p7)
}
  0x2f   : > { %s827_s23 = smov 128   ;;  %s828_s25 = smov 8  }
  0x30   : > { %536 = dma.hbm_to_vmem [thread:$0]  (!%p929_p2), %s1112_s0, 256, %s187_s4, [#allocation3], %s827_s23, %s827_s23, %s828_s25  }
  0x31   : > { %p509_p13 = scmp.ge.s32.totalorder %s824_s19, 1  ;;  %p218_p4 = scmp.lt.s32.totalorder %s824_s19, 3 }
  0x32   : > { %s829_s7 = smov [#allocation5]   ;;  %s655_s11 = scalar_lea.hbm %s1113_s1, 256 }
  0x33   : > { %p960_p8 = pnand %p509_p13, %p218_p4  ;;  %s210_s8 = sshll.u32 %s829_s7, 4  ;;  %s211_s8 = int_to_ptr.vmem [resolvable:$true] %s210_s8 }
  0x34   : > { %p656_p6 = scmp.ne.s32.totalorder %s1113_s1, %s655_s11  ;;  %p662_p9 = scmp.lt.u32.totalorder %s655_s11, %s655_s11 }
  0x35   : > { %s1123_s6 = scalar_select %p960_p8, 1, 0 }
  0x36   : > { %p658_p12 = pnand %p656_p6, %p627_p5  ;;  %p664_p10 = scmp.lt.u32.totalorder %s655_s11, %s1113_s1 }
  0x38   : > { %p659_p0 = pneg %p658_p12  ;;  %p665_p11 = por %p664_p10, %p662_p9 }
  0x3a   : > { %p666_p1 = pnand %p665_p11, %p659_p0 }
  0x3c   : > { %669 = shalt.err (!%p666_p1)
}
  0x3d   : > { %s670_s26 = scalar_lea.vmem %s211_s8, 256  ;;  %s677_s30 = scalar_lea.vmem %s211_s8, 512 }
  0x3e   : > { %p671_p3 = scmp.ne.s32.totalorder %s211_s8, %s670_s26  ;;  %p678_p4 = scmp.lt.s32.totalorder %s211_s8, %s211_s8 }
  0x3f   : > { %p679_p8 = scmp.lt.s32.totalorder %s677_s30, %s670_s26 }
  0x40   : > { %p673_p7 = pnand %p671_p3, %p627_p5 }
  0x41   : > { %p680_p6 = por %p679_p8, %p678_p4 }
  0x42   : > { %p674_p13 = pneg %p673_p7 }
  0x44   : > { %p681_p12 = pnand %p680_p6, %p674_p13 }
  0x46   : > { %684 = shalt.err (!%p681_p12)
}
  0x47   : > { %539 = dma.hbm_to_vmem [thread:$0]  (!%p929_p2), %s1113_s1, 256, %s211_s8, [#allocation6], %s827_s23, %s827_s23, %s828_s25  }
  0x48   : > { %p1124_p0 = scmp.ne.s32.totalorder %s1123_s6, 0 }
  0x49   : > { %s224_s10 = sand.u32 (!%p1124_p0), 1, %s812_s16   ;;  %p1125_p5 = scmp.ne.s32.totalorder (!%p1124_p0), %s1119_s24, 0 }
  0x4a   : > { %222 = sbr.rel (%p1124_p0) target bundleno = 138 (0x8a), region = 28  ;;  %s510_s11 = sshll.u32 (!%p1124_p0), %s224_s10, 4 }
  0x4b   : > { %s225_s15 = scalar_lea.sflag (!%p1124_p0), [#allocation3], %s224_s10  ;;  %s228_s20 = scalar_lea.vmem (!%p1124_p0), [#allocation2], %s510_s11 }
  0x51   : > { %778 = dma.done.wait (%p1125_p5), %s225_s15, 256  }
  0x52   : > { %780 = vsyncadd (%p1125_p5), %s225_s15, 4294967040  ;;  %s234_s5 = scalar_lea.sflag [#allocation6], %s224_s10  ;;  %s237_s4 = scalar_lea.vmem [#allocation5], %s510_s11 }
  0x53   : > { %782 = dma.done.wait (%p1125_p5), %s234_s5, 256  }
  0x54   : > { %784 = vsyncadd (%p1125_p5), %s234_s5, 4294967040  ;;  %s514_s23 = sshll.u32 %s816_s17, 4  ;;  %v290_v0 = vlaneseq  ;;  %s1000_s25 = sand.u32 1, %s800_s13   ;;  %v284_v8 = vld [vmem:[%s228_s20] sm:$0xff]  ;;  %v285_v9 = vld [vmem:[%s228_s20 + $0x8] sm:$0xff]  ;;  %v830_v27 = vmov 0  }
  0x55   : > { %v293_v1 = vstv %s514_s23  ;;  %v286_v10 = vld [vmem:[%s237_s4] sm:$0xff]  ;;  %s512_s6 = sshll.u32 %s1000_s25, 3  ;;  %v287_v11 = vld [vmem:[%s237_s4 + $0x8] sm:$0xff]  ;;  %s519_s24 = sshll.u32 %s816_s17, 7 }
  0x56   : > { %v291_v2 = vshrl.u32 %v290_v0, 7  ;;  %v297_v5 = vand.u32 127, %v290_v0  ;;  %vm304_vm0 = vcmp.lt.f32.partialorder %v286_v10, 4.0  ;;  %v308_v14 = vsub.f32 %v284_v8, %v286_v10  ;;  %s269_s8 = scalar_lea.vmem [#allocation8], %s512_s6  ;;  %s1022_s26 = scalar_lea.vmem [#allocation7], %s512_s6 }
  0x57   : > { %vm305_vm1 = vcmp.lt.f32.partialorder %v287_v11, 4.0  ;;  %v309_v15 = vsub.f32 %v285_v9, %v287_v11  ;;  %s366_s21 = sshll.u32 %s269_s8, 4  ;;  %s353_s30 = sshll.u32 %s1022_s26, 4  ;;  %s1030_s21 = int_to_ptr.vmem [resolvable:$true] %s366_s21  ;;  %s1037_s30 = int_to_ptr.vmem [resolvable:$true] %s353_s30 }
  0x58   : > { %v292_v3 = vadd.s32 8, %v291_v2  ;;  %v294_v4 = vadd.s32 %v293_v1, %v291_v2  ;;  %v310_v17 = vand.u32 2147483647, %v308_v14  ;;  %v314_v18 = vmul.f32 0.5, %v308_v14  ;;  %s1028_s17 = scalar_lea.hbm %s1115_s3, %s519_s24  ;;  %s1035_s15 = scalar_lea.hbm %s1114_s2, %s519_s24 }
  0x59   : > { %v311_v20 = vand.u32 2147483647, %v309_v15  ;;  %v315_v21 = vmul.f32 0.5, %v309_v15  ;;  %s340_s20 = scalar_lea.sflag [#allocation9], %s1000_s25  ;;  %s685_s5 = scalar_lea.vmem %s1030_s21, 128 }
  0x5a   : > { %v295_v6 = vadd.s32 %v293_v1, %v292_v3  ;;  %v298_v7 = vmul.u32 128, %v294_v4  ;;  %vm1007_vm5 = vcmp.lt.f32.partialorder %v310_v17, 1.0  ;;  %v316_v23 = vmul.f32 %v314_v18, %v308_v14  ;;  %p686_p2 = scmp.ne.s32.totalorder %s1030_s21, %s685_s5  ;;  %p1130_p8 = scmp.ne.s32.totalorder %s1120_s28, 0 }
  0x5b   : > { %v515_v24 = vadd.f32 -0.5, %v310_v17  ;;  %vm313_vm7 = vcmp.lt.f32.partialorder %v311_v20, 1.0  ;;  %v317_v25 = vmul.f32 %v315_v21, %v309_v15  ;;  %v516_v26 = vadd.f32 -0.5, %v311_v20  ;;  %s831_s4 = smov [#allocation8]  }
  0x5c   : > { %v299_v12 = vmul.u32 128, %v295_v6  ;;  %v300_v13 = vadd.s32 %v298_v7, %v297_v5  ;;  %p687_p9 = pnand %p686_p2, %p1130_p8  ;;  %s689_s23 = sshll.u32 %s831_s4, 4  ;;  %s690_s23 = int_to_ptr.vmem [resolvable:$false] %s689_s23 }
  0x5d   : > { %v320_v29 = vsel %vm1007_vm5, %v316_v23, %v515_v24  ;;  %v321_v31 = vsel %vm313_vm7, %v317_v25, %v516_v26  ;;  %s691_s6 = scalar_lea.vmem %s690_s23, 256  ;;  %p692_p11 = scmp.lt.s32.totalorder %s1030_s21, %s690_s23 }
  0x5e   : > { %v301_v16 = vadd.s32 %v299_v12, %v297_v5  ;;  %vm302_vm2 = vcmp.lt.s32.totalorder %v300_v13, 2048  ;;  %p688_p10 = pneg %p687_p9  ;;  %p693_p1 = scmp.lt.s32.totalorder %s691_s6, %s685_s5 }
  0x5f   : > { %vm1003_vm3 = vmand %vm302_vm2, %vm304_vm0 }
  0x60   : > { %vm303_vm4 = vcmp.lt.s32.totalorder %v301_v16, 2048  ;;  %v324_v28 = vsel %vm1003_vm3, 1, %v830_v27  ;;  %v322_v32 = vsel %vm1003_vm3, %v320_v29, 0.0  ;;  %p694_p3 = por %p693_p1, %p692_p11 }
  0x61   : > { %vm307_vm6 = vmand %vm303_vm4, %vm305_vm1 }
  0x62   : > { %v325_v30 = vsel %vm307_vm6, 1, %v830_v27  ;;  %v323_v34 = vsel %vm307_vm6, %v321_v31, 0.0  ;;  %p695_p7 = pnand %p694_p3, %p688_p10 }
  0x63   : > { %v331_v33 = vadd.s32 %v325_v30, %v324_v28  ;;  %v327_v35 = vadd.f32 %v323_v34, %v322_v32 }
  0x65   : > { %333 = vst [vmem:[%s269_s8] sm:$0xff] %v331_v33 }
  0x66   : > { %698 = shalt.err (!%p695_p7)
}
  0x67   : > { %s699_s24 = scalar_lea.hbm %s1028_s17, 128  ;;  %s703_s9 = scalar_lea.hbm %s1115_s3, 256 }
  0x68   : > { %p700_p13 = scmp.ne.s32.totalorder %s1028_s17, %s699_s24  ;;  %p704_p12 = scmp.lt.u32.totalorder %s1028_s17, %s1115_s3 }
  0x69   : > { %p705_p0 = scmp.lt.u32.totalorder %s703_s9, %s699_s24  ;;  %p707_p2 = scmp.lt.u32.totalorder %s699_s24, %s1028_s17 }
  0x6a   : > { %p701_p4 = pnand %p700_p13, %p1130_p8 }
  0x6b   : > { %p706_p5 = por %p705_p0, %p704_p12 }
  0x6c   : > { %p702_p6 = pneg %p701_p4 }
  0x6d   : > { %p708_p9 = por %p707_p2, %p706_p5 }
  0x6f   : > { %p709_p10 = pnand %p708_p9, %p702_p6 }
  0x71   : > { %712 = shalt.err (!%p709_p10)
}
  0x72   : > { %530 = dma.vmem_to_hbm [thread:$0]  (%p1130_p8), %s1030_s21, 128, %s1028_s17, %s340_s20   ;;  %329 = vst [vmem:[%s1022_s26] sm:$0xff] %v327_v35 }
  0x73   : > { %s335_s5 = scalar_lea.sflag [#allocation4], %s1000_s25  ;;  %s713_s4 = scalar_lea.vmem %s1037_s30, 128 }
  0x74   : > { %p714_p11 = scmp.ne.s32.totalorder %s1037_s30, %s713_s4  ;;  %s832_s23 = smov [#allocation7]  }
  0x75   : > { %s717_s6 = sshll.u32 %s832_s23, 4  ;;  %s718_s6 = int_to_ptr.vmem [resolvable:$false] %s717_s6 }
  0x76   : > { %p715_p1 = pnand %p714_p11, %p1130_p8  ;;  %s719_s24 = scalar_lea.vmem %s718_s6, 256 }
  0x77   : > { %p720_p7 = scmp.lt.s32.totalorder %s1037_s30, %s718_s6  ;;  %p721_p13 = scmp.lt.s32.totalorder %s719_s24, %s713_s4 }
  0x78   : > { %p716_p3 = pneg %p715_p1 }
  0x79   : > { %p722_p4 = por %p721_p13, %p720_p7 }
  0x7b   : > { %p723_p6 = pnand %p722_p4, %p716_p3 }
  0x7d   : > { %726 = shalt.err (!%p723_p6)
}
  0x7e   : > { %s727_s25 = scalar_lea.hbm %s1035_s15, 128  ;;  %s731_s17 = scalar_lea.hbm %s1114_s2, 256 }
  0x7f   : > { %p728_p12 = scmp.ne.s32.totalorder %s1035_s15, %s727_s25  ;;  %p732_p2 = scmp.lt.u32.totalorder %s1035_s15, %s1114_s2 }
  0x80   : > { %p733_p9 = scmp.lt.u32.totalorder %s731_s17, %s727_s25  ;;  %p735_p11 = scmp.lt.u32.totalorder %s727_s25, %s1035_s15 }
  0x81   : > { %p729_p0 = pnand %p728_p12, %p1130_p8 }
  0x82   : > { %p734_p10 = por %p733_p9, %p732_p2 }
  0x83   : > { %p730_p5 = pneg %p729_p0 }
  0x84   : > { %p736_p1 = por %p735_p11, %p734_p10 }
  0x86   : > { %p737_p3 = pnand %p736_p1, %p730_p5 }
  0x88   : > { %740 = shalt.err (!%p737_p3)
}
  0x89   : > { %529 = dma.vmem_to_hbm [thread:$0]  (%p1130_p8), %s1037_s30, 128, %s1035_s15, %s335_s5  }
  0x8a PF: > { %s378_s7 = sand.u32 1, %s796_s12   ;;  %p1131_p7 = scmp.ne.s32.totalorder %s1121_s29, 0 }
  0x8b   : > { %p1132_p13 = scmp.ge.s32.totalorder %s824_s19, 2  ;;  %s379_s9 = scalar_lea.sflag [#allocation4], %s378_s7 }
  0x8d   : > { %p541_p4 = pnand %p1132_p13, %p1131_p7 }
  0x8f   : > { %786 = dma.done.wait (!%p541_p4), %s379_s9, 128  }
  0x90   : > { %788 = vsyncadd (!%p541_p4), %s379_s9, 4294967168  ;;  %s388_s10 = scalar_lea.sflag [#allocation9], %s378_s7 }
  0x91   : > { %790 = dma.done.wait (!%p541_p4), %s388_s10, 128  }
  0x92   : > { %792 = vsyncadd (!%p541_p4), %s388_s10, 4294967168  ;;  %s26_s19 = sadd.s32 1, %s824_s19   ;;  %s1133_s12 = smov %s800_s13 }
  0x93   : > { %p23_p6 = scmp.ge.s32.totalorder %s26_s19, 4   ;;  %s1134_s13 = smov %s804_s14 }
  0x94   : > { %s1135_s14 = smov %s911_s27  ;;  %s1136_s15 = smov %s812_s16 }
  0x95   : > { %s1102_s16 = smov 0   ;;  %s1137_s17 = smov %s820_s18 }
  0x96   : > { %s1138_s18 = smov %s1140_s22  ;;  %25 = sbr.rel (!%p23_p6) target bundleno = 11 (0xb), region = 107 }
  0x9d   :  { %393 = vsyncpa [#allocation3], 1 }
  0x9e   :  { %395 = vsyncpa [#allocation3 + $0x1], 1 }
  0x9f   :  { %396 = vsyncpa [#allocation6], 1 }
  0xa0   :  { %398 = vsyncpa [#allocation6 + $0x1], 1 }
  0xa1   :  { %399 = vsyncpa [#allocation4], 1 }
  0xa2   :  { %401 = vsyncpa [#allocation4 + $0x1], 1 }
  0xa3   :  { %402 = vsyncpa [#allocation9], 1 }
  0xa4   :  { %404 = vsyncpa [#allocation9 + $0x1], 1 }

</bundles_post_ra>
